<compile_context>
chip_gen: v7x
topology: tpu7x:2x2x1
jax: 0.10.0
libtpu: 0.0.40
codegen_flags: <defaults>
</compile_context>

<pallas_src>
import functools

import jax
import jax.numpy as jnp
from jax.experimental import pallas as pl
from jax.experimental.pallas import tpu as pltpu


def _round_up(x, m):
    return ((x + m - 1) // m) * m


def _cdiv(a, b):
    return -(-a // b)


def _device_kind():
    try:
        return (jax.devices()[0].device_kind or "").lower()
    except Exception:
        return ""


def _tensorcores_per_chip():
    # v7x exposes 2 TensorCores per chip; the "parallel" grid axis shards
    # across them only if the grid has >=2 tiles.
    return 2 if "v7" in _device_kind() else 1


def _default_bf16_epilogue():
    # v5e and older have no bf16 VALU: bf16 elementwise math would just add
    # converts there, so keep the f32 epilogue on those generations.
    kind = _device_kind()
    if ("v3" in kind) or ("v4" in kind) or ("v5" in kind):
        return False
    return True


def qnetwork_kernel(x_ref,
                    w1_ref, b1_ref,
                    w2_ref, b2_ref,
                    w3_ref, b3_ref,
                    w4_ref, b4_ref,
                    out_ref, *, bf16_epilogue):
    # x tile: (block_b, in_pad) f32 -> bf16 for the MXU.
    x = x_ref[...].astype(jnp.bfloat16)

    def layer(h, w_ref, b_ref):
        acc = jnp.dot(h, w_ref[...], preferred_element_type=jnp.float32)
        if bf16_epilogue:
            # bias-add + ReLU in bf16: halves VALU/spill traffic on v6e/v7x.
            return jnp.maximum(acc.astype(jnp.bfloat16)
                               + b_ref[...].astype(jnp.bfloat16), 0)
        # f32 epilogue (v5e path), cast once for the next matmul.
        return jnp.maximum(acc + b_ref[...], 0.0).astype(jnp.bfloat16)

    h1 = layer(x, w1_ref, b1_ref)        # F.relu(fc1(state))
    h2 = layer(h1, w2_ref, b2_ref)       # F.relu(fc2(x))
    h3 = layer(h2, w3_ref, b3_ref)       # F.relu(fc3(x))

    out = jnp.dot(h3, w4_ref[...], preferred_element_type=jnp.float32) + b4_ref[...]
    out_ref[...] = out.astype(out_ref.dtype)   # fc4(x): bf16 lane-dense store


def _choose_batch_tile(B, block_b, min_tiles):
    n_tiles = _cdiv(B, block_b)
    if min_tiles > 1 and B >= 256:
        # Ensure both v7x TensorCores get work once the batch is big enough to
        # amortize the extra ~0.35 us grid step.
        n_tiles = max(n_tiles, min_tiles)
    # Even split across tiles (minimal batch padding), rounded to a
    # bf16-friendly sublane multiple.
    return _round_up(_cdiv(B, n_tiles), 16)


def qnetwork_forward(state, params, *, block_b=512, bf16_epilogue=None):
    """state: [B, input_dims] f32. params: dict from init_params (bf16 weights,
    f32 biases, padded dims). Returns [B, n_actions] f32."""
    if bf16_epilogue is None:
        bf16_epilogue = _default_bf16_epilogue()

    B, in_dims = state.shape
    n_actions = int(params["n_actions"])
    in_pad = params["w1"].shape[0]           # input_dims padded to mult of 128
    out_pad = params["w4"].shape[1]          # n_actions padded to mult of 128

    # Lane-dense feature dim for the x tile / first matmul K dim.
    if in_pad != in_dims:
        state = jnp.pad(state, ((0, 0), (0, in_pad - in_dims)))

    bb = _choose_batch_tile(B, block_b, _tensorcores_per_chip())
    B_pad = _round_up(B, bb)
    if B_pad != B:
        state = jnp.pad(state, ((0, B_pad - B), (0, 0)))

    w1, b1 = params["w1"], params["b1"]
    w2, b2 = params["w2"], params["b2"]
    w3, b3 = params["w3"], params["b3"]
    w4, b4 = params["w4"], params["b4"]

    grid = (B_pad // bb,)

    # Constant index_map for every weight/bias: DMA'd once, VMEM-resident
    # across all batch tiles.
    const_spec = lambda a: pl.BlockSpec(a.shape, lambda i: (0, 0))

    in_specs = [
        pl.BlockSpec((bb, in_pad), lambda i: (i, 0)),    # state tile
        const_spec(w1), const_spec(b1),
        const_spec(w2), const_spec(b2),
        const_spec(w3), const_spec(b3),
        const_spec(w4), const_spec(b4),
    ]
    out_specs = pl.BlockSpec((bb, out_pad), lambda i: (i, 0))

    kernel = functools.partial(qnetwork_kernel, bf16_epilogue=bf16_epilogue)

    out = pl.pallas_call(
        kernel,
        out_shape=jax.ShapeDtypeStruct((B_pad, out_pad), jnp.bfloat16),
        grid=grid,
        in_specs=in_specs,
        out_specs=out_specs,
        compiler_params=pltpu.CompilerParams(
            dimension_semantics=("parallel",)),
    )(state, w1, b1, w2, b2, w3, b3, w4, b4)

    # Slice off padded rows/cols and hand callers f32 Q-values.
    return out[:B, :n_actions].astype(jnp.float32)


def init_params(key, input_dims, fc1_dims=256, fc2_dims=512, n_actions=132,
                weight_dtype=jnp.bfloat16):
    """Deterministic init mimicking nn.Linear's U(-1/sqrt(fan_in), 1/sqrt(fan_in)).
    Weights stored (in, out) in bf16; biases (1, out) in f32.
      * w1 rows zero-padded so input_dims is a multiple of 128 (lane-dense K).
      * layer-4 output zero-padded so n_actions is a multiple of 128
        (lane-dense, unmasked stores); padding columns are exactly zero."""
    in_pad = _round_up(input_dims, 128)
    act_pad = _round_up(n_actions, 128)
    dims = [(input_dims, fc1_dims), (fc1_dims, fc2_dims),
            (fc2_dims, fc1_dims), (fc1_dims, n_actions)]
    params = {}
    for idx, (fan_in, fan_out) in enumerate(dims, start=1):
        key, kw, kb = jax.random.split(key, 3)
        bound = 1.0 / float(fan_in) ** 0.5
        w = jax.random.uniform(kw, (fan_in, fan_out), jnp.float32,
                               minval=-bound, maxval=bound)
        b = jax.random.uniform(kb, (1, fan_out), jnp.float32,
                               minval=-bound, maxval=bound)
        if idx == 1 and fan_in != in_pad:
            w = jnp.pad(w, ((0, in_pad - fan_in), (0, 0)))        # zero rows
        if idx == 4 and fan_out != act_pad:
            w = jnp.pad(w, ((0, 0), (0, act_pad - fan_out)))      # zero cols
            b = jnp.pad(b, ((0, 0), (0, act_pad - fan_out)))
        params[f"w{idx}"] = w.astype(weight_dtype)
        params[f"b{idx}"] = b                                     # keep biases f32
    params["n_actions"] = n_actions
    params["input_dims"] = input_dims
    return params


def reference_forward(state, p, *, bf16_epilogue=None):
    """Pure-JAX reference matching the kernel's bf16-weight / f32-accum math
    (including the per-generation bf16/f32 epilogue choice and bf16 output)."""
    if bf16_epilogue is None:
        bf16_epilogue = _default_bf16_epilogue()
    n_actions = int(p["n_actions"])
    B, in_dims = state.shape
    in_pad = p["w1"].shape[0]
    if in_pad != in_dims:
        state = jnp.pad(state, ((0, 0), (0, in_pad - in_dims)))

    h = state.astype(jnp.bfloat16)
    for i in (1, 2, 3):
        acc = jnp.dot(h, p[f"w{i}"], preferred_element_type=jnp.float32)
        if bf16_epilogue:
            h = jnp.maximum(acc.astype(jnp.bfloat16)
                            + p[f"b{i}"].astype(jnp.bfloat16), 0)
        else:
            h = jnp.maximum(acc + p[f"b{i}"], 0.0).astype(jnp.bfloat16)
    out = jnp.dot(h, p["w4"], preferred_element_type=jnp.float32) + p["b4"]
    out = out.astype(jnp.bfloat16)
    return out[:, :n_actions].astype(jnp.float32)


if __name__ == "__main__":
    key = jax.random.PRNGKey(0)
    k_param, k_state = jax.random.split(key)

    input_dims = 64            # small, consistent with nn.Linear(input_dims, 256)
    params = init_params(k_param, input_dims)

    # 1) Small eval batch (single grid tile, row + feature padding paths).
    state = jax.random.normal(k_state, (8, input_dims), jnp.float32)
    out = jax.block_until_ready(qnetwork_forward(state, params))
    ref = reference_forward(state, params)
    assert out.shape == (8, 132), out.shape
    assert jnp.allclose(out, ref, atol=2e-2, rtol=2e-2), "mismatch (small batch)"

    # 2) Ragged batch forced onto multiple tiles (exercises the parallel grid
    #    axis, even tile split and batch-row padding).
    state2 = jax.random.normal(jax.random.fold_in(k_state, 1),
                               (20, input_dims), jnp.float32)
    out2 = jax.block_until_ready(qnetwork_forward(state2, params, block_b=16))
    ref2 = reference_forward(state2, params)
    assert out2.shape == (20, 132), out2.shape
    assert jnp.allclose(out2, ref2, atol=2e-2, rtol=2e-2), "mismatch (tiled)"

    # 3) Replay-buffer sized batch: default block_b=512 -> multi-tile grid
    #    (both v7x TensorCores busy; step overhead amortized).
    state3 = jax.random.normal(jax.random.fold_in(k_state, 2),
                               (1024, input_dims), jnp.float32)
    out3 = jax.block_until_ready(qnetwork_forward(state3, params))
    ref3 = reference_forward(state3, params)
    assert out3.shape == (1024, 132), out3.shape
    assert jnp.allclose(out3, ref3, atol=2e-2, rtol=2e-2), "mismatch (large batch)"

    print("KERNEL_OK")
</pallas_src>

<mosaic_0001>
module attributes {stable_mosaic.version = 11 : i64} {
  func.func @qnetwork_kernel(%arg0: i32, %arg1: memref<16x128xf32, #tpu.memory_space<vmem>>, %arg2: memref<128x256xbf16, #tpu.memory_space<vmem>>, %arg3: memref<1x256xf32, #tpu.memory_space<vmem>>, %arg4: memref<256x512xbf16, #tpu.memory_space<vmem>>, %arg5: memref<1x512xf32, #tpu.memory_space<vmem>>, %arg6: memref<512x256xbf16, #tpu.memory_space<vmem>>, %arg7: memref<1x256xf32, #tpu.memory_space<vmem>>, %arg8: memref<256x256xbf16, #tpu.memory_space<vmem>>, %arg9: memref<1x256xf32, #tpu.memory_space<vmem>>, %arg10: memref<16x256xbf16, #tpu.memory_space<vmem>>) attributes {dimension_semantics = [#tpu.dimension_semantics<parallel>], iteration_bounds = array<i64: 1>, scalar_prefetch = 0 : i64, scratch_operands = 0 : i64, tpu.core_type = #tpu.core_type<tc>, window_params = [{transform_indices = @transform_0, window_bounds = array<i64: 16, 128>}, {pipeline_mode = #tpu.pipeline_mode<synchronous>, transform_indices = @transform_1, window_bounds = array<i64: 128, 256>}, {pipeline_mode = #tpu.pipeline_mode<synchronous>, transform_indices = @transform_2, window_bounds = array<i64: 1, 256>}, {pipeline_mode = #tpu.pipeline_mode<synchronous>, transform_indices = @transform_3, window_bounds = array<i64: 256, 512>}, {pipeline_mode = #tpu.pipeline_mode<synchronous>, transform_indices = @transform_4, window_bounds = array<i64: 1, 512>}, {pipeline_mode = #tpu.pipeline_mode<synchronous>, transform_indices = @transform_5, window_bounds = array<i64: 512, 256>}, {pipeline_mode = #tpu.pipeline_mode<synchronous>, transform_indices = @transform_6, window_bounds = array<i64: 1, 256>}, {pipeline_mode = #tpu.pipeline_mode<synchronous>, transform_indices = @transform_7, window_bounds = array<i64: 256, 256>}, {pipeline_mode = #tpu.pipeline_mode<synchronous>, transform_indices = @transform_8, window_bounds = array<i64: 1, 256>}, {transform_indices = @transform_9, window_bounds = array<i64: 16, 256>}]} {
    %c0 = arith.constant 0 : index
    %c0_0 = arith.constant 0 : index
    %0 = vector.load %arg1[%c0, %c0_0] : memref<16x128xf32, #tpu.memory_space<vmem>>, vector<16x128xf32>
    %1 = arith.truncf %0 : vector<16x128xf32> to vector<16x128xbf16>
    %c0_1 = arith.constant 0 : index
    %c0_2 = arith.constant 0 : index
    %2 = vector.load %arg2[%c0_1, %c0_2] : memref<128x256xbf16, #tpu.memory_space<vmem>>, vector<128x256xbf16>
    %cst = arith.constant dense<0.000000e+00> : vector<16x256xf32>
    %3 = tpu.matmul %1, %2, %cst {dimension_numbers = #tpu.dot_dimension_numbers<[1], [0], [0], [1], [0, 0, 1, 1], [], []>} : vector<16x128xbf16>, vector<128x256xbf16>, vector<16x256xf32> -> vector<16x256xf32>
    %4 = arith.truncf %3 : vector<16x256xf32> to vector<16x256xbf16>
    %c0_3 = arith.constant 0 : index
    %c0_4 = arith.constant 0 : index
    %5 = vector.load %arg3[%c0_3, %c0_4] : memref<1x256xf32, #tpu.memory_space<vmem>>, vector<1x256xf32>
    %6 = arith.truncf %5 : vector<1x256xf32> to vector<1x256xbf16>
    %7 = vector.broadcast %6 : vector<1x256xbf16> to vector<16x256xbf16>
    %8 = arith.addf %4, %7 : vector<16x256xbf16>
    %cst_5 = arith.constant 0.000000e+00 : bf16
    %9 = vector.broadcast %cst_5 : bf16 to vector<16x256xbf16>
    %10 = arith.maximumf %8, %9 : vector<16x256xbf16>
    %c0_6 = arith.constant 0 : index
    %c0_7 = arith.constant 0 : index
    %11 = vector.load %arg4[%c0_6, %c0_7] : memref<256x512xbf16, #tpu.memory_space<vmem>>, vector<256x512xbf16>
    %cst_8 = arith.constant dense<0.000000e+00> : vector<16x512xf32>
    %12 = tpu.matmul %10, %11, %cst_8 {dimension_numbers = #tpu.dot_dimension_numbers<[1], [0], [0], [1], [0, 0, 1, 1], [], []>} : vector<16x256xbf16>, vector<256x512xbf16>, vector<16x512xf32> -> vector<16x512xf32>
    %13 = arith.truncf %12 : vector<16x512xf32> to vector<16x512xbf16>
    %c0_9 = arith.constant 0 : index
    %c0_10 = arith.constant 0 : index
    %14 = vector.load %arg5[%c0_9, %c0_10] : memref<1x512xf32, #tpu.memory_space<vmem>>, vector<1x512xf32>
    %15 = arith.truncf %14 : vector<1x512xf32> to vector<1x512xbf16>
    %16 = vector.broadcast %15 : vector<1x512xbf16> to vector<16x512xbf16>
    %17 = arith.addf %13, %16 : vector<16x512xbf16>
    %cst_11 = arith.constant 0.000000e+00 : bf16
    %18 = vector.broadcast %cst_11 : bf16 to vector<16x512xbf16>
    %19 = arith.maximumf %17, %18 : vector<16x512xbf16>
    %c0_12 = arith.constant 0 : index
    %c0_13 = arith.constant 0 : index
    %20 = vector.load %arg6[%c0_12, %c0_13] : memref<512x256xbf16, #tpu.memory_space<vmem>>, vector<512x256xbf16>
    %cst_14 = arith.constant dense<0.000000e+00> : vector<16x256xf32>
    %21 = tpu.matmul %19, %20, %cst_14 {dimension_numbers = #tpu.dot_dimension_numbers<[1], [0], [0], [1], [0, 0, 1, 1], [], []>} : vector<16x512xbf16>, vector<512x256xbf16>, vector<16x256xf32> -> vector<16x256xf32>
    %22 = arith.truncf %21 : vector<16x256xf32> to vector<16x256xbf16>
    %c0_15 = arith.constant 0 : index
    %c0_16 = arith.constant 0 : index
    %23 = vector.load %arg7[%c0_15, %c0_16] : memref<1x256xf32, #tpu.memory_space<vmem>>, vector<1x256xf32>
    %24 = arith.truncf %23 : vector<1x256xf32> to vector<1x256xbf16>
    %25 = vector.broadcast %24 : vector<1x256xbf16> to vector<16x256xbf16>
    %26 = arith.addf %22, %25 : vector<16x256xbf16>
    %cst_17 = arith.constant 0.000000e+00 : bf16
    %27 = vector.broadcast %cst_17 : bf16 to vector<16x256xbf16>
    %28 = arith.maximumf %26, %27 : vector<16x256xbf16>
    %c0_18 = arith.constant 0 : index
    %c0_19 = arith.constant 0 : index
    %29 = vector.load %arg8[%c0_18, %c0_19] : memref<256x256xbf16, #tpu.memory_space<vmem>>, vector<256x256xbf16>
    %cst_20 = arith.constant dense<0.000000e+00> : vector<16x256xf32>
    %30 = tpu.matmul %28, %29, %cst_20 {dimension_numbers = #tpu.dot_dimension_numbers<[1], [0], [0], [1], [0, 0, 1, 1], [], []>} : vector<16x256xbf16>, vector<256x256xbf16>, vector<16x256xf32> -> vector<16x256xf32>
    %c0_21 = arith.constant 0 : index
    %c0_22 = arith.constant 0 : index
    %31 = vector.load %arg9[%c0_21, %c0_22] : memref<1x256xf32, #tpu.memory_space<vmem>>, vector<1x256xf32>
    %32 = vector.broadcast %31 : vector<1x256xf32> to vector<16x256xf32>
    %33 = arith.addf %30, %32 : vector<16x256xf32>
    %34 = arith.truncf %33 : vector<16x256xf32> to vector<16x256xbf16>
    %c0_23 = arith.constant 0 : index
    %c0_24 = arith.constant 0 : index
    %35 = vector.load %arg10[%c0_23, %c0_24] : memref<16x256xbf16, #tpu.memory_space<vmem>>, vector<16x256xbf16>
    tpu.vector_store %arg10[%c0_23, %c0_24], %34 {strides = array<i32>} : memref<16x256xbf16, #tpu.memory_space<vmem>>, vector<16x256xbf16>,
    return
  }
  func.func @transform_0(%arg0: i32) -> (i32, i32) {
    %c0_i32 = arith.constant 0 : i32
    %c0_i32_0 = arith.constant 0 : i32
    return %arg0, %c0_i32 : i32, i32
  }
  func.func @transform_1(%arg0: i32) -> (i32, i32) {
    %c0_i32 = arith.constant 0 : i32
    %c0_i32_0 = arith.constant 0 : i32
    %c0_i32_1 = arith.constant 0 : i32
    return %c0_i32, %c0_i32_0 : i32, i32
  }
  func.func @transform_2(%arg0: i32) -> (i32, i32) {
    %c0_i32 = arith.constant 0 : i32
    %c0_i32_0 = arith.constant 0 : i32
    %c0_i32_1 = arith.constant 0 : i32
    return %c0_i32, %c0_i32_0 : i32, i32
  }
  func.func @transform_3(%arg0: i32) -> (i32, i32) {
    %c0_i32 = arith.constant 0 : i32
    %c0_i32_0 = arith.constant 0 : i32
    %c0_i32_1 = arith.constant 0 : i32
    return %c0_i32, %c0_i32_0 : i32, i32
  }
  func.func @transform_4(%arg0: i32) -> (i32, i32) {
    %c0_i32 = arith.constant 0 : i32
    %c0_i32_0 = arith.constant 0 : i32
    %c0_i32_1 = arith.constant 0 : i32
    return %c0_i32, %c0_i32_0 : i32, i32
  }
  func.func @transform_5(%arg0: i32) -> (i32, i32) {
    %c0_i32 = arith.constant 0 : i32
    %c0_i32_0 = arith.constant 0 : i32
    %c0_i32_1 = arith.constant 0 : i32
    return %c0_i32, %c0_i32_0 : i32, i32
  }
  func.func @transform_6(%arg0: i32) -> (i32, i32) {
    %c0_i32 = arith.constant 0 : i32
    %c0_i32_0 = arith.constant 0 : i32
    %c0_i32_1 = arith.constant 0 : i32
    return %c0_i32, %c0_i32_0 : i32, i32
  }
  func.func @transform_7(%arg0: i32) -> (i32, i32) {
    %c0_i32 = arith.constant 0 : i32
    %c0_i32_0 = arith.constant 0 : i32
    %c0_i32_1 = arith.constant 0 : i32
    return %c0_i32, %c0_i32_0 : i32, i32
  }
  func.func @transform_8(%arg0: i32) -> (i32, i32) {
    %c0_i32 = arith.constant 0 : i32
    %c0_i32_0 = arith.constant 0 : i32
    %c0_i32_1 = arith.constant 0 : i32
    return %c0_i32, %c0_i32_0 : i32, i32
  }
  func.func @transform_9(%arg0: i32) -> (i32, i32) {
    %c0_i32 = arith.constant 0 : i32
    %c0_i32_0 = arith.constant 0 : i32
    return %arg0, %c0_i32 : i32, i32
  }
}

</mosaic_0001>

<bundles_post_ra>
// kernel: tpu_custom_call.1
= control target key start
LH: loop header
LB: loop body
LE: loop exit
PB: predicated region body
PF: predicated region fallthrough
CT: control target
= control target key end

     0   :  { %14 = vsyncpa [#allocation3], 0  ;;  %s2409_s0 = inlined_call_operand.hbm [shape: f32[16,128], index: 0, kind: input, shape index: {}]   ;;  %s2410_s1 = inlined_call_operand.hbm [shape: bf16[128,256], index: 1, kind: input, shape index: {}]   ;;  %s2411_s2 = inlined_call_operand.vmem [shape: f32[1,256], index: 2, kind: input, shape index: {}]   ;;  %s2412_s3 = inlined_call_operand.hbm [shape: bf16[256,512], index: 3, kind: input, shape index: {}]   ;;  %s2413_s4 = inlined_call_operand.vmem [shape: f32[1,512], index: 4, kind: input, shape index: {}]   ;;  %s2414_s5 = inlined_call_operand.hbm [shape: bf16[512,256], index: 5, kind: input, shape index: {}]   ;;  %s2415_s6 = inlined_call_operand.vmem [shape: f32[1,256], index: 6, kind: input, shape index: {}]   ;;  %s2416_s7 = inlined_call_operand.hbm [shape: bf16[256,256], index: 7, kind: input, shape index: {}]   ;;  %s2417_s8 = inlined_call_operand.vmem [shape: f32[1,256], index: 8, kind: input, shape index: {}]   ;;  %s2418_s9 = inlined_call_operand.hbm [shape: bf16[16,256], index: 9, kind: output, shape index: {}]  }
   0x1   :  { %15 = vsyncpa [#allocation6], 0 }
   0x2   :  { %16 = vsyncpa [#allocation9], 0 }
   0x3   :  { %17 = vsyncpa [#allocation4], 0  ;;  %s2197_s30 = smov [#allocation5]   ;;  %s2198_s11 = smov [#allocation8]  }
   0x4   :  { %s35_s10 = sshll.u32 %s2197_s30, 4  ;;  %s63_s12 = sshll.u32 %s2198_s11, 4  ;;  %s36_s10 = int_to_ptr.vmem [resolvable:$true] %s35_s10  ;;  %s2258_s12 = int_to_ptr.vmem [resolvable:$true] %s63_s12 }
   0x5   :  { %s2057_s15 = scalar_lea.hbm %s2410_s1, 2048 }
   0x6   :  { %p2058_p0 = scmp.ne.s32.totalorder %s2410_s1, %s2057_s15  ;;  %p2061_p1 = scmp.lt.u32.totalorder %s2057_s15, %s2410_s1 }
   0x8   :  { %p2063_p2 = pnand %p2061_p1, %p2058_p0 }
   0xa   :  { %2066 = shalt.err (!%p2063_p2)
}
   0xb   :  { %s2067_s20 = scalar_lea.vmem %s36_s10, 2048  ;;  %p2072_p4 = scmp.lt.s32.totalorder %s36_s10, %s36_s10 }
   0xc   :  { %p2068_p3 = scmp.ne.s32.totalorder %s36_s10, %s2067_s20  ;;  %p2073_p5 = scmp.lt.s32.totalorder %s2067_s20, %s2067_s20 }
   0xe   :  { %p2074_p6 = por %p2073_p5, %p2072_p4 }
  0x10   :  { %p2075_p7 = pnand %p2074_p6, %p2068_p3 }
  0x12   :  { %2078 = shalt.err (!%p2075_p7)
}
  0x13   :  { %s2199_s21 = smov 128   ;;  %s2200_s22 = smov 8  }
  0x14   :  { %41 = dma.hbm_to_vmem [thread:$0]  %s2410_s1, 2048, %s36_s10, [#allocation6], %s2199_s21, %s2199_s21, %s2200_s22  }
  0x15   :  { %s2079_s27 = scalar_lea.hbm %s2414_s5, 8192 }
  0x16   :  { %p2080_p8 = scmp.ne.s32.totalorder %s2414_s5, %s2079_s27  ;;  %p2083_p9 = scmp.lt.u32.totalorder %s2079_s27, %s2414_s5 }
  0x18   :  { %p2085_p10 = pnand %p2083_p9, %p2080_p8 }
  0x1a   :  { %2088 = shalt.err (!%p2085_p10)
}
  0x1b   :  { %s2089_s13 = scalar_lea.vmem %s2258_s12, 8192  ;;  %p2094_p12 = scmp.lt.s32.totalorder %s2258_s12, %s2258_s12 }
  0x1c   :  { %p2090_p11 = scmp.ne.s32.totalorder %s2258_s12, %s2089_s13  ;;  %p2095_p13 = scmp.lt.s32.totalorder %s2089_s13, %s2089_s13 }
  0x1e   :  { %p2096_p0 = por %p2095_p13, %p2094_p12 }
  0x20   :  { %p2097_p1 = pnand %p2096_p0, %p2090_p11 }
  0x22   :  { %2100 = shalt.err (!%p2097_p1)
}
  0x23   :  { %69 = dma.hbm_to_vmem [thread:$0]  %s2414_s5, 8192, %s2258_s12, [#allocation9], %s2199_s21, %s2199_s21, %s2200_s22  }
  0x24   :  { %s2201_s14 = smov [#allocation2]   ;;  %s2202_s16 = smov [#allocation7]  }
  0x25   :  { %s23_s15 = sshll.u32 %s2201_s14, 4  ;;  %s49_s17 = sshll.u32 %s2202_s16, 4  ;;  %s24_s15 = int_to_ptr.vmem [resolvable:$true] %s23_s15  ;;  %s2295_s17 = int_to_ptr.vmem [resolvable:$true] %s49_s17 }
  0x26   :  { %s2101_s20 = scalar_lea.hbm %s2409_s0, 256 }
  0x27   :  { %p2102_p2 = scmp.ne.s32.totalorder %s2409_s0, %s2101_s20  ;;  %p2105_p3 = scmp.lt.u32.totalorder %s2101_s20, %s2409_s0 }
  0x29   :  { %p2107_p4 = pnand %p2105_p3, %p2102_p2 }
  0x2b   :  { %2110 = shalt.err (!%p2107_p4)
}
  0x2c   :  { %s2111_s5 = scalar_lea.vmem %s24_s15, 256  ;;  %p2116_p6 = scmp.lt.s32.totalorder %s24_s15, %s24_s15 }
  0x2d   :  { %p2112_p5 = scmp.ne.s32.totalorder %s24_s15, %s2111_s5  ;;  %p2117_p7 = scmp.lt.s32.totalorder %s2111_s5, %s2111_s5 }
  0x2f   :  { %p2118_p8 = por %p2117_p7, %p2116_p6 }
  0x31   :  { %p2119_p9 = pnand %p2118_p8, %p2112_p5 }
  0x33   :  { %2122 = shalt.err (!%p2119_p9)
}
  0x34   :  { %29 = dma.hbm_to_vmem [thread:$0]  %s2409_s0, 256, %s24_s15, [#allocation3], %s2199_s21, %s2199_s21, %s2200_s22  }
  0x35   :  { %s2123_s30 = scalar_lea.hbm %s2412_s3, 8192 }
  0x36   :  { %p2124_p10 = scmp.ne.s32.totalorder %s2412_s3, %s2123_s30  ;;  %p2127_p11 = scmp.lt.u32.totalorder %s2123_s30, %s2412_s3 }
  0x38   :  { %p2129_p12 = pnand %p2127_p11, %p2124_p10 }
  0x3a   :  { %2132 = shalt.err (!%p2129_p12)
}
  0x3b   :  { %s2133_s14 = scalar_lea.vmem %s2295_s17, 8192  ;;  %p2138_p0 = scmp.lt.s32.totalorder %s2295_s17, %s2295_s17 }
  0x3c   :  { %p2134_p13 = scmp.ne.s32.totalorder %s2295_s17, %s2133_s14  ;;  %p2139_p1 = scmp.lt.s32.totalorder %s2133_s14, %s2133_s14 }
  0x3e   :  { %p2140_p2 = por %p2139_p1, %p2138_p0 }
  0x40   :  { %p2141_p3 = pnand %p2140_p2, %p2134_p13 }
  0x42   :  { %2144 = shalt.err (!%p2141_p3)
}
  0x43   :  { %s2203_s0 = smov 256   ;;  %s2204_s15 = smov 16  }
  0x44   :  { %55 = dma.hbm_to_vmem [thread:$0]  %s2412_s3, 8192, %s2295_s17, [#allocation6], %s2203_s0, %s2203_s0, %s2204_s15  }
  0x45   :  { %s2205_s19 = smov [#allocation10]   ;;  %s2145_s25 = scalar_lea.hbm %s2416_s7, 4096 }
  0x46   :  { %s77_s20 = sshll.u32 %s2205_s19, 4  ;;  %p2146_p4 = scmp.ne.s32.totalorder %s2416_s7, %s2145_s25  ;;  %s78_s20 = int_to_ptr.vmem [resolvable:$true] %s77_s20 }
  0x47   :  { %p2149_p5 = scmp.lt.u32.totalorder %s2145_s25, %s2416_s7 }
  0x49   :  { %p2151_p6 = pnand %p2149_p5, %p2146_p4 }
  0x4b   :  { %2154 = shalt.err (!%p2151_p6)
}
  0x4c   :  { %s2155_s28 = scalar_lea.vmem %s78_s20, 4096  ;;  %p2160_p8 = scmp.lt.s32.totalorder %s78_s20, %s78_s20 }
  0x4d   :  { %p2156_p7 = scmp.ne.s32.totalorder %s78_s20, %s2155_s28  ;;  %p2161_p9 = scmp.lt.s32.totalorder %s2155_s28, %s2155_s28 }
  0x4f   :  { %p2162_p10 = por %p2161_p9, %p2160_p8 }
  0x51   :  { %p2163_p11 = pnand %p2162_p10, %p2156_p7 }
  0x53   :  { %2166 = shalt.err (!%p2163_p11)
}
  0x54   :  { %83 = dma.hbm_to_vmem [thread:$0]  %s2416_s7, 4096, %s78_s20, [#allocation9], %s2199_s21, %s2199_s21, %s2200_s22  }
  0x55   :  { %2189 = dma.done.wait [#allocation3], 256  }
  0x56   :  { %2190 = vsyncadd [#allocation3], 4294967040 }
  0x57   :  { %2191 = dma.done.wait [#allocation6], 10240  }
  0x58   :  { %2192 = vsyncadd [#allocation6], 4294957056 }
  0x59   :  { %2193 = dma.done.wait [#allocation9], 12288  }
  0x5a   :  { %2194 = vsyncadd [#allocation9], 4294955008  ;;  %v2206_v0 = vmov 0   ;;  %v1793_v1 = vld [vmem:[#allocation5 + $0x4] ss:$8 sps:$4 sm:$0xff]   ;;  %v102_v26 = vld [vmem:[#allocation2] sm:$0xff] }
  0x5b   :  { %233 = vmatprep.mubr.bf16.mxu0 %v2206_v0  ;;  %v1795_v2 = vld [vmem:[#allocation5] ss:$8 sps:$4 sm:$0xff]   ;;  %201 = vmatprep.subr.bf16.mxu0 %v1793_v1  ;;  %v1796_v3 = vld [vmem:[#allocation5 + $0x14] ss:$8 sps:$4 sm:$0xff]   ;;  %v1798_v4 = vld [vmem:[#allocation5 + $0x10] ss:$8 sps:$4 sm:$0xff]  }
  0x5c   :  { %202 = vmatpush1.bf16.msra.mxu0 %v1795_v2  ;;  %v1799_v5 = vld [vmem:[#allocation5 + $0x24] ss:$8 sps:$4 sm:$0xff]   ;;  %v1801_v6 = vld [vmem:[#allocation5 + $0x20] ss:$8 sps:$4 sm:$0xff]   ;;  %v1802_v7 = vld [vmem:[#allocation5 + $0x34] ss:$8 sps:$4 sm:$0xff]  }
  0x5d   :  { %203 = vmatprep.subr.bf16.mxu0 %v1796_v3  ;;  %v1804_v8 = vld [vmem:[#allocation5 + $0x30] ss:$8 sps:$4 sm:$0xff]   ;;  %v1805_v9 = vld [vmem:[#allocation5 + $0x44] ss:$8 sps:$4 sm:$0xff]   ;;  %v1807_v13 = vld [vmem:[#allocation5 + $0x40] ss:$8 sps:$4 sm:$0xff]  }
  0x5e   :  { %v1817_v10 = vld [vmem:[#allocation7 + $0x4] ss:$16 sps:$4 sm:$0xff]   ;;  %v1822_v11 = vld [vmem:[#allocation7] ss:$16 sps:$4 sm:$0xff]   ;;  %v103_v27 = vld [vmem:[#allocation2 + $0x8] sm:$0xff]  ;;  %s2207_s1 = smov [#allocation11]  }
  0x5f   :  { %662 = vmatprep.subr.bf16.mxu1 %v1817_v10  ;;  %v1823_v12 = vld [vmem:[#allocation7 + $0x24] ss:$16 sps:$4 sm:$0xff]   ;;  %v1828_v15 = vld [vmem:[#allocation7 + $0x20] ss:$16 sps:$4 sm:$0xff]   ;;  %v1821_v28 = vld [vmem:[#allocation7 + $0xc] ss:$16 sps:$4 sm:$0xff]   ;;  %v104_v31 = vpack.c.bf16 %v103_v27, %v102_v26 }
  0x60   :  { %204 = vmatpush1.bf16.msra.mxu0 %v1798_v4  ;;  %663 = vmatpush1.bf16.msra.mxu1 %v1822_v11  ;;  %v1808_v14 = vld [vmem:[#allocation5 + $0x54] ss:$8 sps:$4 sm:$0xff]   ;;  %v1810_v17 = vld [vmem:[#allocation5 + $0x50] ss:$8 sps:$4 sm:$0xff]   ;;  %v1811_v18 = vld [vmem:[#allocation5 + $0x64] ss:$8 sps:$4 sm:$0xff]  }
  0x61   :  { %205 = vmatprep.subr.bf16.mxu0 %v1799_v5  ;;  %664 = vmatprep.subr.bf16.mxu1 %v1823_v12  ;;  %v1829_v16 = vld [vmem:[#allocation7 + $0x44] ss:$16 sps:$4 sm:$0xff]   ;;  %v1834_v19 = vld [vmem:[#allocation7 + $0x40] ss:$16 sps:$4 sm:$0xff]   ;;  %v1819_v32 = vld [vmem:[#allocation7 + $0x8] ss:$16 sps:$4 sm:$0xff]  }
  0x62   :  { %v1835_v20 = vld [vmem:[#allocation7 + $0x64] ss:$16 sps:$4 sm:$0xff]   ;;  %v1813_v21 = vld [vmem:[#allocation5 + $0x60] ss:$8 sps:$4 sm:$0xff]   ;;  %v1816_v25 = vld [vmem:[#allocation5 + $0x70] ss:$8 sps:$4 sm:$0xff]  }
  0x63   :  { %v1840_v22 = vld [vmem:[#allocation7 + $0x60] ss:$16 sps:$4 sm:$0xff]   ;;  %v1814_v23 = vld [vmem:[#allocation5 + $0x74] ss:$8 sps:$4 sm:$0xff]   ;;  %v1825_v36 = vld [vmem:[#allocation7 + $0x28] ss:$16 sps:$4 sm:$0xff]  }
  0x64   :  { %206 = vmatpush1.bf16.msra.mxu0 %v1801_v6  ;;  %665 = vmatpush1.bf16.msra.mxu1 %v1828_v15  ;;  %v1841_v24 = vld [vmem:[#allocation7 + $0x84] ss:$16 sps:$4 sm:$0xff]   ;;  %v1846_v29 = vld [vmem:[#allocation7 + $0x80] ss:$16 sps:$4 sm:$0xff]   ;;  %v1827_v34 = vld [vmem:[#allocation7 + $0x2c] ss:$16 sps:$4 sm:$0xff]  }
  0x65   :  { %207 = vmatprep.subr.bf16.mxu0 %v1802_v7  ;;  %666 = vmatprep.subr.bf16.mxu1 %v1829_v16  ;;  %v1847_v30 = vld [vmem:[#allocation7 + $0xa4] ss:$16 sps:$4 sm:$0xff]   ;;  %v1852_v33 = vld [vmem:[#allocation7 + $0xa0] ss:$16 sps:$4 sm:$0xff]   ;;  %v1833_v37 = vld [vmem:[#allocation7 + $0x4c] ss:$16 sps:$4 sm:$0xff]  }
  0x66   :  { %v1853_v35 = vld [vmem:[#allocation7 + $0xc4] ss:$16 sps:$4 sm:$0xff]   ;;  %v1858_v38 = vld [vmem:[#allocation7 + $0xc0] ss:$16 sps:$4 sm:$0xff]   ;;  %v1831_v40 = vld [vmem:[#allocation7 + $0x48] ss:$16 sps:$4 sm:$0xff]  }
  0x67   :  { %v1859_v39 = vld [vmem:[#allocation7 + $0xe4] ss:$16 sps:$4 sm:$0xff]   ;;  %v1864_v41 = vld [vmem:[#allocation7 + $0xe0] ss:$16 sps:$4 sm:$0xff]   ;;  %v1839_v42 = vld [vmem:[#allocation7 + $0x6c] ss:$16 sps:$4 sm:$0xff]  }
  0x68   :  { %208 = vmatpush1.bf16.msra.mxu0 %v1804_v8  ;;  %667 = vmatpush1.bf16.msra.mxu1 %v1834_v19  ;;  %v1865_v43 = vld [vmem:[#allocation7 + $0x104] ss:$16 sps:$4 sm:$0xff]   ;;  %v1837_v44 = vld [vmem:[#allocation7 + $0x68] ss:$16 sps:$4 sm:$0xff]   ;;  %v1845_v45 = vld [vmem:[#allocation7 + $0x8c] ss:$16 sps:$4 sm:$0xff]  }
  0x69   :  { %209 = vmatprep.subr.bf16.mxu0 %v1805_v9  ;;  %668 = vmatprep.subr.bf16.mxu1 %v1835_v20  ;;  %v1870_v46 = vld [vmem:[#allocation7 + $0x100] ss:$16 sps:$4 sm:$0xff]   ;;  %v1871_v47 = vld [vmem:[#allocation7 + $0x124] ss:$16 sps:$4 sm:$0xff]   ;;  %v1843_v48 = vld [vmem:[#allocation7 + $0x88] ss:$16 sps:$4 sm:$0xff]  }
  0x6a   :  { %v1851_v49 = vld [vmem:[#allocation7 + $0xac] ss:$16 sps:$4 sm:$0xff]   ;;  %v1876_v50 = vld [vmem:[#allocation7 + $0x120] ss:$16 sps:$4 sm:$0xff]   ;;  %v1877_v51 = vld [vmem:[#allocation7 + $0x144] ss:$16 sps:$4 sm:$0xff]  }
  0x6b   :  { %v1849_v52 = vld [vmem:[#allocation7 + $0xa8] ss:$16 sps:$4 sm:$0xff]   ;;  %v1882_v53 = vld [vmem:[#allocation7 + $0x140] ss:$16 sps:$4 sm:$0xff]   ;;  %v1857_v54 = vld [vmem:[#allocation7 + $0xcc] ss:$16 sps:$4 sm:$0xff]  }
  0x6c   :  { %210 = vmatpush1.bf16.msra.mxu0 %v1807_v13  ;;  %669 = vmatpush1.bf16.msra.mxu1 %v1840_v22  ;;  %v1883_v55 = vld [vmem:[#allocation7 + $0x164] ss:$16 sps:$4 sm:$0xff]   ;;  %v1855_v56 = vld [vmem:[#allocation7 + $0xc8] ss:$16 sps:$4 sm:$0xff]   ;;  %v1888_v57 = vld [vmem:[#allocation7 + $0x160] ss:$16 sps:$4 sm:$0xff]   ;;  %v248_v22 = vlaneseq }
  0x6d   :  { %211 = vmatprep.subr.bf16.mxu0 %v1808_v14  ;;  %670 = vmatprep.subr.bf16.mxu1 %v1841_v24  ;;  %v1863_v58 = vld [vmem:[#allocation7 + $0xec] ss:$16 sps:$4 sm:$0xff]   ;;  %v1889_v59 = vld [vmem:[#allocation7 + $0x184] ss:$16 sps:$4 sm:$0xff]   ;;  %v1861_v60 = vld [vmem:[#allocation7 + $0xe8] ss:$16 sps:$4 sm:$0xff]  }
  0x6e   :  { %v1894_v61 = vld [vmem:[#allocation7 + $0x180] ss:$16 sps:$4 sm:$0xff]   ;;  %v1869_v62 = vld [vmem:[#allocation7 + $0x10c] ss:$16 sps:$4 sm:$0xff]   ;;  %v1895_v63 = vld [vmem:[#allocation7 + $0x1a4] ss:$16 sps:$4 sm:$0xff]  }
  0x6f   :  { %v1867_v1 = vld [vmem:[#allocation7 + $0x108] ss:$16 sps:$4 sm:$0xff]   ;;  %v1875_v2 = vld [vmem:[#allocation7 + $0x12c] ss:$16 sps:$4 sm:$0xff]   ;;  %v1900_v12 = vld [vmem:[#allocation7 + $0x1a0] ss:$16 sps:$4 sm:$0xff]  }
  0x70   :  { %212 = vmatpush1.bf16.msra.mxu0 %v1810_v17  ;;  %671 = vmatpush1.bf16.msra.mxu1 %v1846_v29  ;;  %v1873_v3 = vld [vmem:[#allocation7 + $0x128] ss:$16 sps:$4 sm:$0xff]   ;;  %v1881_v4 = vld [vmem:[#allocation7 + $0x14c] ss:$16 sps:$4 sm:$0xff]   ;;  %v1901_v13 = vld [vmem:[#allocation7 + $0x1c4] ss:$16 sps:$4 sm:$0xff]  }
  0x71   :  { %213 = vmatprep.subr.bf16.mxu0 %v1811_v18  ;;  %672 = vmatprep.subr.bf16.mxu1 %v1847_v30  ;;  %v1879_v5 = vld [vmem:[#allocation7 + $0x148] ss:$16 sps:$4 sm:$0xff]   ;;  %v1887_v6 = vld [vmem:[#allocation7 + $0x16c] ss:$16 sps:$4 sm:$0xff]   ;;  %v1906_v16 = vld [vmem:[#allocation7 + $0x1c0] ss:$16 sps:$4 sm:$0xff]  }
  0x72   :  { %v1885_v7 = vld [vmem:[#allocation7 + $0x168] ss:$16 sps:$4 sm:$0xff]   ;;  %v1893_v8 = vld [vmem:[#allocation7 + $0x18c] ss:$16 sps:$4 sm:$0xff]   ;;  %v1907_v17 = vld [vmem:[#allocation7 + $0x1e4] ss:$16 sps:$4 sm:$0xff]  }
  0x73   :  { %v1891_v9 = vld [vmem:[#allocation7 + $0x188] ss:$16 sps:$4 sm:$0xff]   ;;  %v1899_v10 = vld [vmem:[#allocation7 + $0x1ac] ss:$16 sps:$4 sm:$0xff]   ;;  %v1912_v20 = vld [vmem:[#allocation7 + $0x1e0] ss:$16 sps:$4 sm:$0xff]  }
  0x74   :  { %214 = vmatpush1.bf16.msra.mxu0 %v1813_v21  ;;  %673 = vmatpush1.bf16.msra.mxu1 %v1852_v33  ;;  %v1897_v11 = vld [vmem:[#allocation7 + $0x1a8] ss:$16 sps:$4 sm:$0xff]   ;;  %v1905_v14 = vld [vmem:[#allocation7 + $0x1cc] ss:$16 sps:$4 sm:$0xff]   ;;  %s1584_s10 = sshll.u32 %s2207_s1, 4  ;;  %s1585_s10 = int_to_ptr.vmem [resolvable:$true] %s1584_s10 }
  0x75   :  { %215 = vmatprep.subr.bf16.mxu0 %v1814_v23  ;;  %674 = vmatprep.subr.bf16.mxu1 %v1853_v35  ;;  %v1903_v15 = vld [vmem:[#allocation7 + $0x1c8] ss:$16 sps:$4 sm:$0xff]   ;;  %v1911_v18 = vld [vmem:[#allocation7 + $0x1ec] ss:$16 sps:$4 sm:$0xff]   ;;  %v2345_v23 = vshrl.u32 %v248_v22, 7  ;;  %p2172_p13 = scmp.lt.s32.totalorder %s1585_s10, %s1585_s10 }
  0x76   :  { %v1909_v19 = vld [vmem:[#allocation7 + $0x1e8] ss:$16 sps:$4 sm:$0xff]   ;;  %v1915_v21 = vld [vmem:[#allocation8 + $0x4] ss:$8 sps:$4 sm:$0xff]  }
  0x77   :  { %v2348_v24 = vsub.s32 0, %v2345_v23  ;;  %v2354_v26 = vsub.s32 1, %v2345_v23  ;;  %v2023_v22 = vld [vmem:[#allocation10 + $0x44] ss:$8 sps:$4 sm:$0xff]  }
  0x78   :  { %216 = vmatpush1.bf16.msra.mxu0 %v1816_v25  ;;  %675 = vmatpush1.bf16.msra.mxu1 %v1858_v38  ;;  %v246_v25 = vld [vmem:[%s2411_s2] sm:$0x3] }
  0x79   :  { %705 = vmatprep.subr.bf16.mxu0 %v1821_v28  ;;  %676 = vmatprep.subr.bf16.mxu1 %v1859_v39  ;;  %v251_v27 = vrot.slane %v246_v25, %v2348_v24  ;;  %v255_v28 = vrot.slane %v246_v25, %v2354_v26  ;;  %v2021_v25 = vld [vmem:[#allocation10 + $0x40] ss:$8 sps:$4 sm:$0xff]  }
  0x7b   :  { %234 = vmatmul.mubr.bf16.vlgmr.msra.gmra.mrb[0].mxu0 %v104_v31  ;;  %v258_v29 = vpack.c.bf16 %v251_v27, %v251_v27  ;;  %v259_v30 = vpack.c.bf16 %v255_v28, %v255_v28  ;;  %v2026_v27 = vld [vmem:[#allocation10 + $0x54] ss:$8 sps:$4 sm:$0xff]   ;;  %v2024_v28 = vld [vmem:[#allocation10 + $0x50] ss:$8 sps:$4 sm:$0xff]  }
  0x7c   :  { %706 = vmatpush1.bf16.msra.mxu0 %v1819_v32  ;;  %677 = vmatpush1.bf16.msra.mxu1 %v1864_v41 }
  0x7d   :  { %707 = vmatprep.subr.bf16.mxu0 %v1827_v34  ;;  %678 = vmatprep.subr.bf16.mxu1 %v1865_v43  ;;  %v261_v31 = vpack.i.b16 %v258_v29, %v258_v29  ;;  %v268_v32 = vpack.i.b16 %v259_v30, %v259_v30  ;;  %v2029_v29 = vld [vmem:[#allocation10 + $0x64] ss:$8 sps:$4 sm:$0xff]   ;;  %v2027_v30 = vld [vmem:[#allocation10 + $0x60] ss:$8 sps:$4 sm:$0xff]  }
  0x7f   :  { %v266_v35 = vrot.slane %v261_v31, %v2348_v24  ;;  %v2032_v31 = vld [vmem:[#allocation10 + $0x74] ss:$8 sps:$4 sm:$0xff]  }
  0x80   :  { %708 = vmatpush1.bf16.msra.mxu0 %v1825_v36  ;;  %679 = vmatpush1.bf16.msra.mxu1 %v1870_v46  ;;  %v1918_v46 = vld [vmem:[#allocation8 + $0x14] ss:$8 sps:$4 sm:$0xff]  }
  0x81   :  { %709 = vmatprep.subr.bf16.mxu0 %v1833_v37  ;;  %680 = vmatprep.subr.bf16.mxu1 %v1871_v47  ;;  %v273_v37 = vrot.slane %v268_v32, %v2348_v24  ;;  %v1916_v47 = vld [vmem:[#allocation8 + $0x10] ss:$8 sps:$4 sm:$0xff]  }
  0x82   :  { %v2030_v32 = vld [vmem:[#allocation10 + $0x70] ss:$8 sps:$4 sm:$0xff]  }
  0x84   :  { %710 = vmatpush1.bf16.msra.mxu0 %v1831_v40  ;;  %681 = vmatpush1.bf16.msra.mxu1 %v1876_v50  ;;  %v1924_v50 = vld [vmem:[#allocation8 + $0x34] ss:$8 sps:$4 sm:$0xff]  }
  0x85   :  { %711 = vmatprep.subr.bf16.mxu0 %v1839_v42  ;;  %682 = vmatprep.subr.bf16.mxu1 %v1877_v51  ;;  %v1922_v51 = vld [vmem:[#allocation8 + $0x30] ss:$8 sps:$4 sm:$0xff]  }
  0x88   :  { %712 = vmatpush1.bf16.msra.mxu0 %v1837_v44  ;;  %683 = vmatpush1.bf16.msra.mxu1 %v1882_v53  ;;  %v1913_v44 = vld [vmem:[#allocation8] ss:$8 sps:$4 sm:$0xff]  }
  0x89   :  { %713 = vmatprep.subr.bf16.mxu0 %v1845_v45  ;;  %684 = vmatprep.subr.bf16.mxu1 %v1883_v55  ;;  %v1925_v53 = vld [vmem:[#allocation8 + $0x40] ss:$8 sps:$4 sm:$0xff]   ;;  %v1928_v55 = vld [vmem:[#allocation8 + $0x50] ss:$8 sps:$4 sm:$0xff]  }
  0x8c   :  { %714 = vmatpush1.bf16.msra.mxu0 %v1843_v48  ;;  %685 = vmatpush1.bf16.msra.mxu1 %v1888_v57  ;;  %v1921_v48 = vld [vmem:[#allocation8 + $0x24] ss:$8 sps:$4 sm:$0xff]   ;;  %v1931_v57 = vld [vmem:[#allocation8 + $0x60] ss:$8 sps:$4 sm:$0xff]  }
  0x8d   :  { %715 = vmatprep.subr.bf16.mxu0 %v1851_v49  ;;  %686 = vmatprep.subr.bf16.mxu1 %v1889_v59  ;;  %v1919_v49 = vld [vmem:[#allocation8 + $0x20] ss:$8 sps:$4 sm:$0xff]   ;;  %v1934_v59 = vld [vmem:[#allocation8 + $0x70] ss:$8 sps:$4 sm:$0xff]  }
  0x90   :  { %716 = vmatpush1.bf16.msra.mxu0 %v1849_v52  ;;  %687 = vmatpush1.bf16.msra.mxu1 %v1894_v61  ;;  %v1927_v52 = vld [vmem:[#allocation8 + $0x44] ss:$8 sps:$4 sm:$0xff]   ;;  %v1937_v61 = vld [vmem:[#allocation8 + $0x80] ss:$8 sps:$4 sm:$0xff]  }
  0x91   :  { %717 = vmatprep.subr.bf16.mxu0 %v1857_v54  ;;  %688 = vmatprep.subr.bf16.mxu1 %v1895_v63  ;;  %v1930_v54 = vld [vmem:[#allocation8 + $0x54] ss:$8 sps:$4 sm:$0xff]   ;;  %v1940_v63 = vld [vmem:[#allocation8 + $0x90] ss:$8 sps:$4 sm:$0xff]  }
  0x94   :  { %718 = vmatpush1.bf16.msra.mxu0 %v1855_v56  ;;  %689 = vmatpush1.bf16.msra.mxu1 %v1900_v12  ;;  %v1933_v56 = vld [vmem:[#allocation8 + $0x64] ss:$8 sps:$4 sm:$0xff]   ;;  %v1958_v12 = vld [vmem:[#allocation8 + $0xf0] ss:$8 sps:$4 sm:$0xff]  }
  0x95   :  { %719 = vmatprep.subr.bf16.mxu0 %v1863_v58  ;;  %690 = vmatprep.subr.bf16.mxu1 %v1901_v13  ;;  %v1936_v58 = vld [vmem:[#allocation8 + $0x74] ss:$8 sps:$4 sm:$0xff]   ;;  %v1963_v13 = vld [vmem:[#allocation8 + $0x104] ss:$8 sps:$4 sm:$0xff]  }
  0x98   :  { %720 = vmatpush1.bf16.msra.mxu0 %v1861_v60  ;;  %691 = vmatpush1.bf16.msra.mxu1 %v1906_v16  ;;  %v1939_v60 = vld [vmem:[#allocation8 + $0x84] ss:$8 sps:$4 sm:$0xff]   ;;  %v2014_v16 = vld [vmem:[#allocation10 + $0x14] ss:$8 sps:$4 sm:$0xff]  }
  0x99   :  { %721 = vmatprep.subr.bf16.mxu0 %v1869_v62  ;;  %692 = vmatprep.subr.bf16.mxu1 %v1907_v17  ;;  %v1942_v62 = vld [vmem:[#allocation8 + $0x94] ss:$8 sps:$4 sm:$0xff]   ;;  %v2012_v17 = vld [vmem:[#allocation10 + $0x10] ss:$8 sps:$4 sm:$0xff]  }
  0x9c   :  { %722 = vmatpush1.bf16.msra.mxu0 %v1867_v1  ;;  %693 = vmatpush1.bf16.msra.mxu1 %v1912_v20  ;;  %v1945_v1 = vld [vmem:[#allocation8 + $0xa4] ss:$8 sps:$4 sm:$0xff]   ;;  %v2020_v20 = vld [vmem:[#allocation10 + $0x34] ss:$8 sps:$4 sm:$0xff]  }
  0x9d   :  { %723 = vmatprep.subr.bf16.mxu0 %v1875_v2  ;;  %1198 = vmatprep.subr.bf16.mxu1 %v1915_v21  ;;  %v1943_v2 = vld [vmem:[#allocation8 + $0xa0] ss:$8 sps:$4 sm:$0xff]   ;;  %v2018_v21 = vld [vmem:[#allocation10 + $0x30] ss:$8 sps:$4 sm:$0xff]  }
  0xa0   :  { %724 = vmatpush1.bf16.msra.mxu0 %v1873_v3  ;;  %v1948_v3 = vld [vmem:[#allocation8 + $0xb4] ss:$8 sps:$4 sm:$0xff]  }
  0xa1   :  { %725 = vmatprep.subr.bf16.mxu0 %v1881_v4  ;;  %v1946_v4 = vld [vmem:[#allocation8 + $0xb0] ss:$8 sps:$4 sm:$0xff]  }
  0xa4   :  { %726 = vmatpush1.bf16.msra.mxu0 %v1879_v5  ;;  %v1951_v5 = vld [vmem:[#allocation8 + $0xc4] ss:$8 sps:$4 sm:$0xff]  }
  0xa5   :  { %727 = vmatprep.subr.bf16.mxu0 %v1887_v6  ;;  %v1949_v6 = vld [vmem:[#allocation8 + $0xc0] ss:$8 sps:$4 sm:$0xff]  }
  0xa8   :  { %728 = vmatpush1.bf16.msra.mxu0 %v1885_v7  ;;  %v1954_v7 = vld [vmem:[#allocation8 + $0xd4] ss:$8 sps:$4 sm:$0xff]  }
  0xa9   :  { %729 = vmatprep.subr.bf16.mxu0 %v1893_v8  ;;  %v1952_v8 = vld [vmem:[#allocation8 + $0xd0] ss:$8 sps:$4 sm:$0xff]  }
  0xac   :  { %730 = vmatpush1.bf16.msra.mxu0 %v1891_v9  ;;  %v1957_v9 = vld [vmem:[#allocation8 + $0xe4] ss:$8 sps:$4 sm:$0xff]  }
  0xad   :  { %731 = vmatprep.subr.bf16.mxu0 %v1899_v10  ;;  %v1955_v10 = vld [vmem:[#allocation8 + $0xe0] ss:$8 sps:$4 sm:$0xff]  }
  0xb0   :  { %732 = vmatpush1.bf16.msra.mxu0 %v1897_v11  ;;  %v1960_v11 = vld [vmem:[#allocation8 + $0xf4] ss:$8 sps:$4 sm:$0xff]  }
  0xb1   :  { %733 = vmatprep.subr.bf16.mxu0 %v1905_v14  ;;  %v2009_v14 = vld [vmem:[#allocation10] ss:$8 sps:$4 sm:$0xff]  }
  0xb4   :  { %734 = vmatpush1.bf16.msra.mxu0 %v1903_v15  ;;  %v2011_v15 = vld [vmem:[#allocation10 + $0x4] ss:$8 sps:$4 sm:$0xff]  }
  0xb5   :  { %735 = vmatprep.subr.bf16.mxu0 %v1911_v18  ;;  %v2017_v18 = vld [vmem:[#allocation10 + $0x24] ss:$8 sps:$4 sm:$0xff]  }
  0xb8   :  { %736 = vmatpush1.bf16.msra.mxu0 %v1909_v19  ;;  %v2015_v19 = vld [vmem:[#allocation10 + $0x20] ss:$8 sps:$4 sm:$0xff]  }
  0xb9   :  { %1522 = vmatprep.subr.bf16.mxu0 %v2011_v15 }
 0x14e   :  { %v235_v33 = vpop.f32.mrb[0].mxu0 }
 0x14f   :  { %v237_v34 = vpop.f32.mrb[1].mxu0 }
 0x150   :  { %v239_v36 = vpop.f32.mrb[2].mxu0 }
 0x151   :  { %v244_v38 = vpack.c.bf16 %v239_v36, %v235_v33  ;;  %v241_v39 = vpop.f32.mrb[3].mxu0  ;;  %v2035_v33 = vld [vmem:[#allocation10 + $0x84] ss:$8 sps:$4 sm:$0xff]   ;;  %v2036_v36 = vld [vmem:[#allocation10 + $0x90] ss:$8 sps:$4 sm:$0xff]  }
 0x152   :  { %v245_v40 = vpack.c.bf16 %v241_v39, %v237_v34  ;;  %v2033_v34 = vld [vmem:[#allocation10 + $0x80] ss:$8 sps:$4 sm:$0xff]   ;;  %v752_v39 = vld [vmem:[%s2413_s4] sm:$0xf] }
 0x153   :  { %v274_v41 = vadd.bf16 %v266_v35, %v244_v38  ;;  %v2038_v35 = vld [vmem:[#allocation10 + $0x94] ss:$8 sps:$4 sm:$0xff]   ;;  %v764_v38 = vsub.s32 2, %v2345_v23 }
 0x154   :  { %v275_v42 = vadd.bf16 %v273_v37, %v245_v40  ;;  %v2041_v37 = vld [vmem:[#allocation10 + $0xa4] ss:$8 sps:$4 sm:$0xff]   ;;  %v768_v40 = vsub.s32 3, %v2345_v23  ;;  %v2045_v23 = vld [vmem:[#allocation10 + $0xc0] ss:$8 sps:$4 sm:$0xff]  }
 0x155   :  { %v276_v45 = vmax.bf16 %v2206_v0, %v274_v41  ;;  %v2039_v41 = vld [vmem:[#allocation10 + $0xa0] ss:$8 sps:$4 sm:$0xff]  }
 0x156   :  { %v277_v43 = vmax.bf16 %v2206_v0, %v275_v42  ;;  %v2044_v42 = vld [vmem:[#allocation10 + $0xb4] ss:$8 sps:$4 sm:$0xff]  }
 0x158   :  { %694 = vmatprep.mubr.bf16.mxu1 %v277_v43  ;;  %737 = vmatprep.mubr.bf16.mxu0 %v277_v43  ;;  %v757_v43 = vrot.slane %v752_v39, %v2348_v24 }
 0x159   :  { %695 = vmatmul.mubr.bf16.vlgmr.msra.gmra.mrb[0].mxu1 %v276_v45  ;;  %738 = vmatmul.mubr.bf16.vlgmr.msra.gmra.mrb[4].mxu0 %v276_v45  ;;  %v761_v45 = vrot.slane %v752_v39, %v2354_v26 }
 0x15a   :  { %1199 = vmatpush1.bf16.msra.mxu1 %v1913_v44  ;;  %1523 = vmatpush1.bf16.msra.mxu0 %v2009_v14  ;;  %v765_v44 = vrot.slane %v752_v39, %v764_v38  ;;  %v1985_v38 = vld [vmem:[#allocation8 + $0x180] ss:$8 sps:$4 sm:$0xff]  }
 0x15b   :  { %1200 = vmatprep.subr.bf16.mxu1 %v1918_v46  ;;  %1524 = vmatprep.subr.bf16.mxu0 %v2014_v16  ;;  %v769_v46 = vrot.slane %v752_v39, %v768_v40  ;;  %v1990_v39 = vld [vmem:[#allocation8 + $0x194] ss:$8 sps:$4 sm:$0xff]   ;;  %v1988_v40 = vld [vmem:[#allocation8 + $0x190] ss:$8 sps:$4 sm:$0xff]  }
 0x15e   :  { %1201 = vmatpush1.bf16.msra.mxu1 %v1916_v47  ;;  %1525 = vmatpush1.bf16.msra.mxu0 %v2012_v17  ;;  %v2042_v47 = vld [vmem:[#allocation10 + $0xb0] ss:$8 sps:$4 sm:$0xff]   ;;  %v1961_v17 = vld [vmem:[#allocation8 + $0x100] ss:$8 sps:$4 sm:$0xff]  }
 0x15f   :  { %1202 = vmatprep.subr.bf16.mxu1 %v1921_v48  ;;  %1526 = vmatprep.subr.bf16.mxu0 %v2017_v18  ;;  %v2047_v48 = vld [vmem:[#allocation10 + $0xc4] ss:$8 sps:$4 sm:$0xff]  }
 0x162   :  { %1203 = vmatpush1.bf16.msra.mxu1 %v1919_v49  ;;  %1527 = vmatpush1.bf16.msra.mxu0 %v2015_v19  ;;  %v774_v49 = vpack.c.bf16 %v757_v43, %v757_v43  ;;  %v1966_v19 = vld [vmem:[#allocation8 + $0x114] ss:$8 sps:$4 sm:$0xff]  }
 0x163   :  { %1204 = vmatprep.subr.bf16.mxu1 %v1924_v50  ;;  %1528 = vmatprep.subr.bf16.mxu0 %v2020_v20  ;;  %v776_v50 = vpack.c.bf16 %v765_v44, %v765_v44  ;;  %v1996_v43 = vld [vmem:[#allocation8 + $0x1b4] ss:$8 sps:$4 sm:$0xff]   ;;  %v1994_v44 = vld [vmem:[#allocation8 + $0x1b0] ss:$8 sps:$4 sm:$0xff]  }
 0x166   :  { %1205 = vmatpush1.bf16.msra.mxu1 %v1922_v51  ;;  %1529 = vmatpush1.bf16.msra.mxu0 %v2018_v21  ;;  %v775_v51 = vpack.c.bf16 %v761_v45, %v761_v45  ;;  %v1964_v21 = vld [vmem:[#allocation8 + $0x110] ss:$8 sps:$4 sm:$0xff]   ;;  %v1999_v45 = vld [vmem:[#allocation8 + $0x1c4] ss:$8 sps:$4 sm:$0xff]  }
 0x167   :  { %1206 = vmatprep.subr.bf16.mxu1 %v1927_v52  ;;  %1530 = vmatprep.subr.bf16.mxu0 %v2023_v22  ;;  %v777_v52 = vpack.c.bf16 %v769_v46, %v769_v46  ;;  %v1969_v22 = vld [vmem:[#allocation8 + $0x124] ss:$8 sps:$4 sm:$0xff]   ;;  %v1997_v46 = vld [vmem:[#allocation8 + $0x1c0] ss:$8 sps:$4 sm:$0xff]  }
 0x16a   :  { %1207 = vmatpush1.bf16.msra.mxu1 %v1925_v53  ;;  %1531 = vmatpush1.bf16.msra.mxu0 %v2021_v25  ;;  %v2050_v53 = vld [vmem:[#allocation10 + $0xd4] ss:$8 sps:$4 sm:$0xff]   ;;  %v1967_v25 = vld [vmem:[#allocation8 + $0x120] ss:$8 sps:$4 sm:$0xff]  }
 0x16b   :  { %1208 = vmatprep.subr.bf16.mxu1 %v1930_v54  ;;  %1532 = vmatprep.subr.bf16.mxu0 %v2026_v27  ;;  %v779_v54 = vpack.i.b16 %v774_v49, %v774_v49  ;;  %v1972_v27 = vld [vmem:[#allocation8 + $0x134] ss:$8 sps:$4 sm:$0xff]   ;;  %v2005_v49 = vld [vmem:[#allocation8 + $0x1e4] ss:$8 sps:$4 sm:$0xff]  }
 0x16e   :  { %1209 = vmatpush1.bf16.msra.mxu1 %v1928_v55  ;;  %1533 = vmatpush1.bf16.msra.mxu0 %v2024_v28  ;;  %v793_v55 = vpack.i.b16 %v776_v50, %v776_v50  ;;  %v1970_v28 = vld [vmem:[#allocation8 + $0x130] ss:$8 sps:$4 sm:$0xff]   ;;  %v2003_v50 = vld [vmem:[#allocation8 + $0x1e0] ss:$8 sps:$4 sm:$0xff]  }
 0x16f   :  { %1210 = vmatprep.subr.bf16.mxu1 %v1933_v56  ;;  %1534 = vmatprep.subr.bf16.mxu0 %v2029_v29  ;;  %v786_v56 = vpack.i.b16 %v775_v51, %v775_v51  ;;  %v1975_v29 = vld [vmem:[#allocation8 + $0x144] ss:$8 sps:$4 sm:$0xff]   ;;  %v2008_v51 = vld [vmem:[#allocation8 + $0x1f4] ss:$8 sps:$4 sm:$0xff]  }
 0x172   :  { %1211 = vmatpush1.bf16.msra.mxu1 %v1931_v57  ;;  %1535 = vmatpush1.bf16.msra.mxu0 %v2027_v30  ;;  %v800_v57 = vpack.i.b16 %v777_v52, %v777_v52  ;;  %v1973_v30 = vld [vmem:[#allocation8 + $0x140] ss:$8 sps:$4 sm:$0xff]   ;;  %v2006_v52 = vld [vmem:[#allocation8 + $0x1f0] ss:$8 sps:$4 sm:$0xff]  }
 0x173   :  { %1212 = vmatprep.subr.bf16.mxu1 %v1936_v58  ;;  %1536 = vmatprep.subr.bf16.mxu0 %v2032_v31  ;;  %v2048_v58 = vld [vmem:[#allocation10 + $0xd0] ss:$8 sps:$4 sm:$0xff]   ;;  %v1978_v31 = vld [vmem:[#allocation8 + $0x154] ss:$8 sps:$4 sm:$0xff]  }
 0x176   :  { %1213 = vmatpush1.bf16.msra.mxu1 %v1934_v59  ;;  %1537 = vmatpush1.bf16.msra.mxu0 %v2030_v32  ;;  %v1976_v32 = vld [vmem:[#allocation8 + $0x150] ss:$8 sps:$4 sm:$0xff]  }
 0x177   :  { %1214 = vmatprep.subr.bf16.mxu1 %v1939_v60  ;;  %1538 = vmatprep.subr.bf16.mxu0 %v2035_v33  ;;  %v1981_v33 = vld [vmem:[#allocation8 + $0x164] ss:$8 sps:$4 sm:$0xff]  }
 0x17a   :  { %1215 = vmatpush1.bf16.msra.mxu1 %v1937_v61  ;;  %1539 = vmatpush1.bf16.msra.mxu0 %v2033_v34  ;;  %v1979_v34 = vld [vmem:[#allocation8 + $0x160] ss:$8 sps:$4 sm:$0xff]  }
 0x17b   :  { %1216 = vmatprep.subr.bf16.mxu1 %v1942_v62  ;;  %1540 = vmatprep.subr.bf16.mxu0 %v2038_v35  ;;  %v1984_v35 = vld [vmem:[#allocation8 + $0x174] ss:$8 sps:$4 sm:$0xff]  }
 0x17e   :  { %1217 = vmatpush1.bf16.msra.mxu1 %v1940_v63  ;;  %1541 = vmatpush1.bf16.msra.mxu0 %v2036_v36  ;;  %v784_v63 = vrot.slane %v779_v54, %v2348_v24  ;;  %v1982_v36 = vld [vmem:[#allocation8 + $0x170] ss:$8 sps:$4 sm:$0xff]   ;;  %v2051_v54 = vld [vmem:[#allocation10 + $0xe0] ss:$8 sps:$4 sm:$0xff]  }
 0x17f   :  { %1218 = vmatprep.subr.bf16.mxu1 %v1945_v1  ;;  %1542 = vmatprep.subr.bf16.mxu0 %v2041_v37  ;;  %v798_v1 = vrot.slane %v793_v55, %v2348_v24  ;;  %v1987_v37 = vld [vmem:[#allocation8 + $0x184] ss:$8 sps:$4 sm:$0xff]   ;;  %v2056_v55 = vld [vmem:[#allocation10 + $0xf4] ss:$8 sps:$4 sm:$0xff]  }
 0x182   :  { %1219 = vmatpush1.bf16.msra.mxu1 %v1943_v2  ;;  %1543 = vmatpush1.bf16.msra.mxu0 %v2039_v41  ;;  %v1993_v41 = vld [vmem:[#allocation8 + $0x1a4] ss:$8 sps:$4 sm:$0xff]  }
 0x183   :  { %1220 = vmatprep.subr.bf16.mxu1 %v1948_v3  ;;  %1544 = vmatprep.subr.bf16.mxu0 %v2044_v42  ;;  %v1991_v42 = vld [vmem:[#allocation8 + $0x1a0] ss:$8 sps:$4 sm:$0xff]  }
 0x186   :  { %1221 = vmatpush1.bf16.msra.mxu1 %v1946_v4  ;;  %1545 = vmatpush1.bf16.msra.mxu0 %v2042_v47  ;;  %v791_v4 = vrot.slane %v786_v56, %v2348_v24  ;;  %v2002_v47 = vld [vmem:[#allocation8 + $0x1d4] ss:$8 sps:$4 sm:$0xff]   ;;  %v2054_v56 = vld [vmem:[#allocation10 + $0xf0] ss:$8 sps:$4 sm:$0xff]  }
 0x187   :  { %1222 = vmatprep.subr.bf16.mxu1 %v1951_v5  ;;  %1546 = vmatprep.subr.bf16.mxu0 %v2047_v48  ;;  %v805_v5 = vrot.slane %v800_v57, %v2348_v24  ;;  %v2000_v48 = vld [vmem:[#allocation8 + $0x1d0] ss:$8 sps:$4 sm:$0xff]  }
 0x188   :  { %v1286_v57 = vld [vmem:[%s2415_s6] sm:$0x3] }
 0x18a   :  { %1223 = vmatpush1.bf16.msra.mxu1 %v1949_v6  ;;  %1547 = vmatpush1.bf16.msra.mxu0 %v2045_v23 }
 0x18b   :  { %1224 = vmatprep.subr.bf16.mxu1 %v1954_v7  ;;  %1548 = vmatprep.subr.bf16.mxu0 %v2050_v53  ;;  %v2053_v53 = vld [vmem:[#allocation10 + $0xe4] ss:$8 sps:$4 sm:$0xff]  }
 0x18e   :  { %1225 = vmatpush1.bf16.msra.mxu1 %v1952_v8  ;;  %1549 = vmatpush1.bf16.msra.mxu0 %v2048_v58  ;;  %v1291_v58 = vrot.slane %v1286_v57, %v2348_v24 }
 0x18f   :  { %1226 = vmatprep.subr.bf16.mxu1 %v1957_v9  ;;  %1550 = vmatprep.subr.bf16.mxu0 %v2053_v53 }
 0x192   :  { %1227 = vmatpush1.bf16.msra.mxu1 %v1955_v10  ;;  %1551 = vmatpush1.bf16.msra.mxu0 %v2051_v54 }
 0x193   :  { %1228 = vmatprep.subr.bf16.mxu1 %v1960_v11  ;;  %1552 = vmatprep.subr.bf16.mxu0 %v2056_v55 }
 0x196   :  { %1229 = vmatpush1.bf16.msra.mxu1 %v1958_v12  ;;  %1553 = vmatpush1.bf16.msra.mxu0 %v2054_v56 }
 0x197   :  { %1241 = vmatprep.subr.bf16.mxu1 %v1963_v13 }
 0x22c   :  { %v696_v59 = vpop.f32.mrb[0].mxu1  ;;  %v739_v60 = vpop.f32.mrb[4].mxu0 }
 0x22d   :  { %v698_v61 = vpop.f32.mrb[1].mxu1  ;;  %v741_v62 = vpop.f32.mrb[5].mxu0 }
 0x22e   :  { %v700_v2 = vpop.f32.mrb[2].mxu1  ;;  %v743_v3 = vpop.f32.mrb[6].mxu0 }
 0x22f   :  { %v748_v6 = vpack.c.bf16 %v700_v2, %v696_v59  ;;  %v750_v7 = vpack.c.bf16 %v743_v3, %v739_v60  ;;  %v702_v8 = vpop.f32.mrb[3].mxu1  ;;  %v745_v9 = vpop.f32.mrb[7].mxu0  ;;  %v1295_v59 = vrot.slane %v1286_v57, %v2354_v26  ;;  %v1298_v60 = vpack.c.bf16 %v1291_v58, %v1291_v58 }
 0x230   :  { %v749_v10 = vpack.c.bf16 %v702_v8, %v698_v61  ;;  %v751_v11 = vpack.c.bf16 %v745_v9, %v741_v62 }
 0x231   :  { %v806_v12 = vadd.bf16 %v784_v63, %v748_v6  ;;  %v2373_v13 = vadd.bf16 %v798_v1, %v750_v7  ;;  %v1299_v61 = vpack.c.bf16 %v1295_v59, %v1295_v59  ;;  %v1301_v62 = vpack.i.b16 %v1298_v60, %v1298_v60 }
 0x232   :  { %v807_v14 = vadd.bf16 %v791_v4, %v749_v10  ;;  %v809_v15 = vadd.bf16 %v805_v5, %v751_v11 }
 0x233   :  { %v810_v18 = vmax.bf16 %v2206_v0, %v806_v12  ;;  %v812_v23 = vmax.bf16 %v2206_v0, %v2373_v13  ;;  %v1308_v63 = vpack.i.b16 %v1299_v61, %v1299_v61  ;;  %v1306_v3 = vrot.slane %v1301_v62, %v2348_v24  ;;  %v1350_v13 = vld [vmem:[%s2417_s8] sm:$0x3]  ;;  %s2167_s8 = scalar_lea.vmem %s1585_s10, 256 }
 0x234   :  { %v811_v16 = vmax.bf16 %v2206_v0, %v807_v14  ;;  %v813_v20 = vmax.bf16 %v2206_v0, %v809_v15  ;;  %v1355_v14 = vrot.slane %v1350_v13, %v2348_v24  ;;  %v1359_v15 = vrot.slane %v1350_v13, %v2354_v26  ;;  %p2168_p12 = scmp.ne.s32.totalorder %s1585_s10, %s2167_s8  ;;  %p2173_p0 = scmp.lt.s32.totalorder %s2167_s8, %s2167_s8 }
 0x235   :  { %v1313_v5 = vrot.slane %v1308_v63, %v2348_v24 }
 0x236   :  { %1230 = vmatprep.mubr.bf16.mxu1 %v811_v16  ;;  %p2174_p1 = por %p2173_p0, %p2172_p13 }
 0x237   :  { %1231 = vmatmul.mubr.bf16.vlgmr.msra.gmra.mrb[4].mxu1 %v810_v18 }
 0x238   :  { %1242 = vmatpush1.bf16.msra.mxu1 %v1961_v17  ;;  %1273 = vmatprep.mubr.bf16.mxu1 %v813_v20  ;;  %p2175_p2 = pnand %p2174_p1, %p2168_p12 }
 0x239   :  { %1243 = vmatprep.subr.bf16.mxu1 %v1966_v19 }
 0x23c   :  { %1244 = vmatpush1.bf16.msra.mxu1 %v1964_v21 }
 0x23d   :  { %1245 = vmatprep.subr.bf16.mxu1 %v1969_v22 }
 0x240   :  { %1246 = vmatpush1.bf16.msra.mxu1 %v1967_v25 }
 0x241   :  { %1247 = vmatprep.subr.bf16.mxu1 %v1972_v27 }
 0x244   :  { %1248 = vmatpush1.bf16.msra.mxu1 %v1970_v28 }
 0x245   :  { %1249 = vmatprep.subr.bf16.mxu1 %v1975_v29 }
 0x248   :  { %1250 = vmatpush1.bf16.msra.mxu1 %v1973_v30 }
 0x249   :  { %1251 = vmatprep.subr.bf16.mxu1 %v1978_v31 }
 0x24c   :  { %1252 = vmatpush1.bf16.msra.mxu1 %v1976_v32 }
 0x24d   :  { %1253 = vmatprep.subr.bf16.mxu1 %v1981_v33 }
 0x250   :  { %1254 = vmatpush1.bf16.msra.mxu1 %v1979_v34 }
 0x251   :  { %1255 = vmatprep.subr.bf16.mxu1 %v1984_v35 }
 0x254   :  { %1256 = vmatpush1.bf16.msra.mxu1 %v1982_v36 }
 0x255   :  { %1257 = vmatprep.subr.bf16.mxu1 %v1987_v37 }
 0x258   :  { %1258 = vmatpush1.bf16.msra.mxu1 %v1985_v38 }
 0x259   :  { %1259 = vmatprep.subr.bf16.mxu1 %v1990_v39 }
 0x25c   :  { %1260 = vmatpush1.bf16.msra.mxu1 %v1988_v40 }
 0x25d   :  { %1261 = vmatprep.subr.bf16.mxu1 %v1993_v41 }
 0x260   :  { %1262 = vmatpush1.bf16.msra.mxu1 %v1991_v42 }
 0x261   :  { %1263 = vmatprep.subr.bf16.mxu1 %v1996_v43 }
 0x264   :  { %1264 = vmatpush1.bf16.msra.mxu1 %v1994_v44 }
 0x265   :  { %1265 = vmatprep.subr.bf16.mxu1 %v1999_v45 }
 0x268   :  { %1266 = vmatpush1.bf16.msra.mxu1 %v1997_v46 }
 0x269   :  { %1267 = vmatprep.subr.bf16.mxu1 %v2002_v47 }
 0x26c   :  { %1268 = vmatpush1.bf16.msra.mxu1 %v2000_v48 }
 0x26d   :  { %1269 = vmatprep.subr.bf16.mxu1 %v2005_v49 }
 0x270   :  { %1270 = vmatpush1.bf16.msra.mxu1 %v2003_v50 }
 0x271   :  { %1271 = vmatprep.subr.bf16.mxu1 %v2008_v51 }
 0x274   :  { %1272 = vmatpush1.bf16.msra.mxu1 %v2006_v52 }
 0x277   :  { %1274 = vmatmul.mubr.bf16.vlgmr.msra.gmra.mrb[4].mxu1 %v812_v23 }
 0x34a   :  { %v1275_v1 = vpop.f32.mrb[4].mxu1 }
 0x34b   :  { %v1277_v2 = vpop.f32.mrb[5].mxu1 }
 0x34c   :  { %v1279_v4 = vpop.f32.mrb[6].mxu1 }
 0x34d   :  { %v1284_v6 = vpack.c.bf16 %v1279_v4, %v1275_v1  ;;  %v1281_v7 = vpop.f32.mrb[7].mxu1 }
 0x34e   :  { %v1285_v8 = vpack.c.bf16 %v1281_v7, %v1277_v2 }
 0x34f   :  { %v1314_v9 = vadd.bf16 %v1306_v3, %v1284_v6 }
 0x350   :  { %v1315_v10 = vadd.bf16 %v1313_v5, %v1285_v8 }
 0x351   :  { %v1316_v12 = vmax.bf16 %v2206_v0, %v1314_v9 }
 0x352   :  { %v1317_v11 = vmax.bf16 %v2206_v0, %v1315_v10 }
 0x354   :  { %1554 = vmatprep.mubr.bf16.mxu0 %v1317_v11 }
 0x355   :  { %1555 = vmatmul.mubr.bf16.vlgmr.msra.gmra.mrb[8].mxu0 %v1316_v12 }
 0x428   :  { %v1556_v16 = vpop.f32.mrb[8].mxu0 }
 0x429   :  { %v1557_v17 = vadd.f32 %v1556_v16, %v1355_v14  ;;  %v1558_v18 = vpop.f32.mrb[9].mxu0 }
 0x42a   :  { %v1559_v19 = vadd.f32 %v1558_v18, %v1359_v15  ;;  %v1560_v20 = vpop.f32.mrb[10].mxu0 }
 0x42b   :  { %v1561_v21 = vadd.f32 %v1560_v20, %v1355_v14  ;;  %v1562_v22 = vpop.f32.mrb[11].mxu0 }
 0x42c   :  { %v1776_v0 = vpack.c.bf16 %v1559_v19, %v1557_v17  ;;  %v1563_v25 = vadd.f32 %v1562_v22, %v1359_v15 }
 0x42e   :  { %1577 = vst [vmem:[#allocation11] sm:$0xff] %v1776_v0  ;;  %v1777_v27 = vpack.c.bf16 %v1563_v25, %v1561_v21 }
 0x430   :  { %1578 = vst [vmem:[#allocation11 + $0x8] sm:$0xff] %v1777_v27 }
 0x431   :  { %2178 = shalt.err (!%p2175_p2)
}
 0x432   :  { %s2179_s15 = scalar_lea.hbm %s2418_s9, 256 }
 0x433   :  { %p2180_p3 = scmp.ne.s32.totalorder %s2418_s9, %s2179_s15  ;;  %p2183_p4 = scmp.lt.u32.totalorder %s2179_s15, %s2418_s9 }
 0x435   :  { %p2185_p5 = pnand %p2183_p4, %p2180_p3 }
 0x437   :  { %2188 = shalt.err (!%p2185_p5)
}
 0x438   :  { %1590 = dma.vmem_to_hbm [thread:$0]  %s1585_s10, 256, %s2418_s9, [#allocation4], %s2199_s21, %s2199_s21, %s2200_s22  }
 0x439   :  { %2195 = dma.done.wait [#allocation4], 256  }
 0x43a   :  { %2196 = vsyncadd [#allocation4], 4294967040 }
 0x43b   :  { %1594 = vsyncpa [#allocation3], 1 }
 0x43c   :  { %1595 = vsyncpa [#allocation6], 1 }
 0x43d   :  { %1596 = vsyncpa [#allocation9], 1 }
 0x43e   :  { %1597 = vsyncpa [#allocation4], 1 }

</bundles_post_ra>
